<compile_context>
chip_gen: v7x
topology: tpu7x:2x2x1
jax: 0.10.0
libtpu: 0.0.40
codegen_flags: <defaults>
</compile_context>

<pallas_src>
import functools

import jax
import jax.numpy as jnp
from jax.experimental import pallas as pl
from jax.experimental.pallas import tpu as pltpu

EPS = 1e-6

# Flipped to False (once) if pipeline_mode=pl.Buffered(1) is rejected at lowering.
_SINGLE_BUFFER_INVARIANTS = True


def _round_up(n: int, m: int) -> int:
    return (n + m - 1) // m * m


def _vmem_capacity_bytes() -> int:
    try:
        return int(pltpu.get_tpu_info().vmem_capacity_bytes)
    except Exception:
        return 64 * 2**20  # conservative (v7x per-core VMEM)


def _vmem_need_bytes(tm: int, d: int, x_isz: int, o_isz: int, w_buffers: int) -> int:
    return (
        2 * tm * d * x_isz                    # x tile, double-buffered
        + 2 * tm * d * o_isz                  # out tile, double-buffered
        + w_buffers * (d * d * 2 + d * 4)     # bf16 W' + f32 fused bias
        + tm * d * (4 + 4 + 2 + 4 + 4)        # f32 x, centered, bf16 ln, acc, x+y
    )


def _sublayer_connection_kernel(x_ref, w_ref, b_ref, o_ref,
                                *, d: int, eps: float, approx_recip: bool):
    x = x_ref[...].astype(jnp.float32)                       # (tm, d)

    # --- LayerNorm core: unbiased std, eps added to std (torch.std path) ---
    mean = jnp.sum(x, axis=-1, keepdims=True) * (1.0 / d)
    centered = x - mean
    # TODO(synk): d == 1 -> torch.std returns NaN; the max(d-1,1) guard differs.
    var = jnp.sum(centered * centered, axis=-1, keepdims=True) * (1.0 / max(d - 1, 1))
    std = jnp.sqrt(var) + eps
    if approx_recip:
        inv = pl.reciprocal(std, approx=True)                 # EUP, nearly free
    else:
        inv = 1.0 / std
    # a_2 / b_2 are folded into W' / b' on the host, so only the core remains.
    ln = (centered * inv).astype(jnp.bfloat16)

    # --- sublayer: dense hidden->hidden on the MXU (bf16 in, f32 accumulate) ---
    y = jnp.dot(ln, w_ref[...], preferred_element_type=jnp.float32) + b_ref[...]

    # --- dropout (inference => identity) + residual add ---
    o_ref[...] = (x + y).astype(o_ref.dtype)


def prepare_sublayer_params(a2, b2, w, wb):
    """One-time weight prep (hoist the cast/fold out of the per-call hot path).

    Folds LayerNorm's affine into the dense sublayer:
        W' = diag(a_2) @ W     (bf16, MXU operand)
        b' = b_2 @ W + wb      (f32)
    """
    a2 = a2.astype(jnp.float32)
    b2 = b2.astype(jnp.float32)
    w32 = w.astype(jnp.float32)
    wb = wb.astype(jnp.float32)
    w_fused = (a2[:, None] * w32).astype(jnp.bfloat16)        # (D, D) bf16
    b_fused = (b2 @ w32 + wb).reshape(1, -1)                  # (1, D) f32
    return w_fused, b_fused


def _build_call(rows, d, tm, out_dtype, vmem_limit, eps, approx_recip,
                single_buffer_invariants):
    inv_kw = ({"pipeline_mode": pl.Buffered(buffer_count=1)}
              if single_buffer_invariants else {})
    kernel = functools.partial(_sublayer_connection_kernel,
                               d=d, eps=eps, approx_recip=approx_recip)
    return pl.pallas_call(
        kernel,
        out_shape=jax.ShapeDtypeStruct((rows, d), out_dtype),
        grid_spec=pltpu.PrefetchScalarGridSpec(
            num_scalar_prefetch=0,
            grid=(pl.cdiv(rows, tm),),                        # ragged tail handled by Pallas
            in_specs=[
                pl.BlockSpec((tm, d), lambda i: (i, 0)),                 # x rows
                pl.BlockSpec((d, d), lambda i: (0, 0), **inv_kw),        # W' (grid-invariant)
                pl.BlockSpec((1, d), lambda i: (0, 0), **inv_kw),        # b' (grid-invariant)
            ],
            out_specs=pl.BlockSpec((tm, d), lambda i: (i, 0)),
        ),
        compiler_params=pltpu.CompilerParams(
            dimension_semantics=("parallel",),                # megacore-sharded rows
            vmem_limit_bytes=vmem_limit),
    )


def sublayer_connection(x, w_fused, b_fused, *, row_tile=512, eps=EPS,
                        approx_reciprocal=True, out_dtype=None):
    """x: [B, S, D] -> [B, S, D].  w_fused/b_fused from prepare_sublayer_params."""
    global _SINGLE_BUFFER_INVARIANTS
    b, s, d = x.shape
    rows = b * s
    out_dtype = x.dtype if out_dtype is None else out_dtype

    # --- pick the row tile --------------------------------------------------
    if rows <= row_tile:
        # Small inputs: split into two blocks (both v7x TensorCores get work)
        # when possible; otherwise one block equal to the full row extent.
        tm = _round_up(pl.cdiv(rows, 2), 8) if rows >= 16 else rows
    else:
        tm = _round_up(row_tile, 256)                 # MXU-friendly M (multiple of 256)
        while tm > 256 and pl.cdiv(rows, tm) < 4:     # >= 2 grid steps per v7x core
            tm -= 256

    x_isz = jnp.dtype(x.dtype).itemsize
    o_isz = jnp.dtype(out_dtype).itemsize
    vmem_cap = _vmem_capacity_bytes()
    w_bufs = 1 if _SINGLE_BUFFER_INVARIANTS else 2
    # Shrink the row tile if the working set would not fit comfortably in VMEM.
    while tm > 256 and _vmem_need_bytes(tm, d, x_isz, o_isz, w_bufs) > 0.85 * vmem_cap:
        tm = max(256, tm // 2)
    need = _vmem_need_bytes(tm, d, x_isz, o_isz, 2)   # worst case: double-buffered W'
    vmem_limit = int(min(0.9 * vmem_cap, max(need + (4 << 20), 32 << 20)))

    x2 = x.reshape(rows, d)                            # view-style reshape, no pad/slice
    args = (rows, d, tm, out_dtype, vmem_limit, eps, approx_reciprocal)
    if _SINGLE_BUFFER_INVARIANTS:
        try:
            out = _build_call(*args, single_buffer_invariants=True)(x2, w_fused, b_fused)
        except Exception:
            # pipeline_mode=Buffered(1) not honored on this JAX/Mosaic version:
            # fall back to default (double-buffered) invariants.
            _SINGLE_BUFFER_INVARIANTS = False
            out = _build_call(*args, single_buffer_invariants=False)(x2, w_fused, b_fused)
    else:
        out = _build_call(*args, single_buffer_invariants=False)(x2, w_fused, b_fused)
    return out.reshape(b, s, d)


def _reference(x, a2, b2, w, wb, eps=EPS):
    """Pure-JAX reference for x + Dense(LayerNorm(x)) (dropout = identity),
    mirroring the kernel's fused-weight bf16 MXU numerics."""
    xf = x.astype(jnp.float32)
    d = xf.shape[-1]
    mean = jnp.mean(xf, axis=-1, keepdims=True)
    c = xf - mean
    std = jnp.sqrt(jnp.sum(c * c, axis=-1, keepdims=True) / max(d - 1, 1))
    ln_core = c / (std + eps)
    w_fused, b_fused = prepare_sublayer_params(a2, b2, w, wb)
    y = jnp.dot(ln_core.astype(jnp.bfloat16), w_fused,
                preferred_element_type=jnp.float32) + b_fused.reshape(-1)
    return (xf + y).astype(x.dtype)


def _make_inputs(key, batch, seq, hidden, dtype=jnp.float32):
    kx, kw, kb, ka, kb2 = jax.random.split(key, 5)
    x = jax.random.normal(kx, (batch, seq, hidden), dtype=dtype)
    # Non-trivial affine params to exercise the host-side fold.
    a2 = 1.0 + 0.5 * jax.random.normal(ka, (hidden,), jnp.float32)
    b2 = 0.1 * jax.random.normal(kb2, (hidden,), jnp.float32)
    w = jax.random.normal(kw, (hidden, hidden), jnp.float32) / jnp.sqrt(hidden)
    wb = jax.random.normal(kb, (hidden,), jnp.float32) * 0.01
    return x, a2, b2, w, wb


if __name__ == "__main__":
    key = jax.random.PRNGKey(0)
    k1, k2 = jax.random.split(key)

    # Primary small shape consistent with the module: [batch, seq, hidden].
    x, a2, b2, w, wb = _make_inputs(k1, batch=2, seq=8, hidden=32)
    wf, bf = prepare_sublayer_params(a2, b2, w, wb)     # one-time weight prep
    out = jax.block_until_ready(sublayer_connection(x, wf, bf))
    ref = _reference(x, a2, b2, w, wb)
    assert out.shape == x.shape
    assert jnp.allclose(out, ref, atol=2e-2, rtol=2e-2)

    # Secondary check: lane-aligned hidden (128) with a row count (18) that is
    # not a multiple of the row tile -> exercises the ragged last row block
    # (no wrapper-side padding / slicing passes).
    x2, a22, b22, w2, wb2 = _make_inputs(k2, batch=2, seq=9, hidden=128)
    wf2, bf2 = prepare_sublayer_params(a22, b22, w2, wb2)
    out2 = jax.block_until_ready(sublayer_connection(x2, wf2, bf2))
    ref2 = _reference(x2, a22, b22, w2, wb2)
    assert out2.shape == x2.shape
    assert jnp.allclose(out2, ref2, atol=2e-2, rtol=2e-2)

    print("KERNEL_OK")
</pallas_src>

<mosaic_0001>
module attributes {stable_mosaic.version = 11 : i64} {
  func.func @_sublayer_connection_kernel(%arg0: i32, %arg1: memref<8x32xf32, #tpu.memory_space<vmem>>, %arg2: memref<32x32xbf16, #tpu.memory_space<vmem>>, %arg3: memref<1x32xf32, #tpu.memory_space<vmem>>, %arg4: memref<8x32xf32, #tpu.memory_space<vmem>>) attributes {dimension_semantics = [#tpu.dimension_semantics<parallel>], iteration_bounds = array<i64: 2>, scalar_prefetch = 0 : i64, scratch_operands = 0 : i64, tpu.core_type = #tpu.core_type<tc>, window_params = [{transform_indices = @transform_0, window_bounds = array<i64: 8, 32>}, {pipeline_mode = #tpu.pipeline_mode<synchronous>, transform_indices = @transform_1, window_bounds = array<i64: 32, 32>}, {pipeline_mode = #tpu.pipeline_mode<synchronous>, transform_indices = @transform_2, window_bounds = array<i64: 1, 32>}, {transform_indices = @transform_3, window_bounds = array<i64: 8, 32>}]} {
    %c0 = arith.constant 0 : index
    %c0_0 = arith.constant 0 : index
    %0 = vector.load %arg1[%c0, %c0_0] : memref<8x32xf32, #tpu.memory_space<vmem>>, vector<8x32xf32>
    %cst = arith.constant dense<0.000000e+00> : vector<8xf32>
    %1 = vector.multi_reduction <add>, %0, %cst [1] : vector<8x32xf32> to vector<8xf32>
    %2 = vector.shape_cast %1 : vector<8xf32> to vector<8x1xf32>
    %cst_1 = arith.constant 3.125000e-02 : f32
    %3 = vector.broadcast %cst_1 : f32 to vector<8x1xf32>
    %4 = arith.mulf %2, %3 : vector<8x1xf32>
    %5 = vector.broadcast %4 : vector<8x1xf32> to vector<8x32xf32>
    %6 = arith.subf %0, %5 : vector<8x32xf32>
    %7 = arith.mulf %6, %6 : vector<8x32xf32>
    %cst_2 = arith.constant dense<0.000000e+00> : vector<8xf32>
    %8 = vector.multi_reduction <add>, %7, %cst_2 [1] : vector<8x32xf32> to vector<8xf32>
    %9 = vector.shape_cast %8 : vector<8xf32> to vector<8x1xf32>
    %cst_3 = arith.constant 0.0322580636 : f32
    %10 = vector.broadcast %cst_3 : f32 to vector<8x1xf32>
    %11 = arith.mulf %9, %10 : vector<8x1xf32>
    %12 = math.sqrt %11 : vector<8x1xf32>
    %cst_4 = arith.constant 9.99999997E-7 : f32
    %13 = vector.broadcast %cst_4 : f32 to vector<8x1xf32>
    %14 = arith.addf %12, %13 : vector<8x1xf32>
    %15 = tpu.reciprocal %14 {approx = true} : vector<8x1xf32> -> vector<8x1xf32>
    %16 = vector.broadcast %15 : vector<8x1xf32> to vector<8x32xf32>
    %17 = arith.mulf %6, %16 : vector<8x32xf32>
    %18 = arith.truncf %17 : vector<8x32xf32> to vector<8x32xbf16>
    %c0_5 = arith.constant 0 : index
    %c0_6 = arith.constant 0 : index
    %19 = vector.load %arg2[%c0_5, %c0_6] : memref<32x32xbf16, #tpu.memory_space<vmem>>, vector<32x32xbf16>
    %cst_7 = arith.constant dense<0.000000e+00> : vector<8x32xf32>
    %20 = tpu.matmul %18, %19, %cst_7 {dimension_numbers = #tpu.dot_dimension_numbers<[1], [0], [0], [1], [0, 0, 1, 1], [], []>} : vector<8x32xbf16>, vector<32x32xbf16>, vector<8x32xf32> -> vector<8x32xf32>
    %c0_8 = arith.constant 0 : index
    %c0_9 = arith.constant 0 : index
    %21 = vector.load %arg3[%c0_8, %c0_9] : memref<1x32xf32, #tpu.memory_space<vmem>>, vector<1x32xf32>
    %22 = vector.broadcast %21 : vector<1x32xf32> to vector<8x32xf32>
    %23 = arith.addf %20, %22 : vector<8x32xf32>
    %24 = arith.addf %0, %23 : vector<8x32xf32>
    %c0_10 = arith.constant 0 : index
    %c0_11 = arith.constant 0 : index
    %25 = vector.load %arg4[%c0_10, %c0_11] : memref<8x32xf32, #tpu.memory_space<vmem>>, vector<8x32xf32>
    tpu.vector_store %arg4[%c0_10, %c0_11], %24 {strides = array<i32>} : memref<8x32xf32, #tpu.memory_space<vmem>>, vector<8x32xf32>,
    return
  }
  func.func @transform_0(%arg0: i32) -> (i32, i32) {
    %c0_i32 = arith.constant 0 : i32
    %c0_i32_0 = arith.constant 0 : i32
    return %arg0, %c0_i32 : i32, i32
  }
  func.func @transform_1(%arg0: i32) -> (i32, i32) {
    %c0_i32 = arith.constant 0 : i32
    %c0_i32_0 = arith.constant 0 : i32
    %c0_i32_1 = arith.constant 0 : i32
    return %c0_i32, %c0_i32_0 : i32, i32
  }
  func.func @transform_2(%arg0: i32) -> (i32, i32) {
    %c0_i32 = arith.constant 0 : i32
    %c0_i32_0 = arith.constant 0 : i32
    %c0_i32_1 = arith.constant 0 : i32
    return %c0_i32, %c0_i32_0 : i32, i32
  }
  func.func @transform_3(%arg0: i32) -> (i32, i32) {
    %c0_i32 = arith.constant 0 : i32
    %c0_i32_0 = arith.constant 0 : i32
    return %arg0, %c0_i32 : i32, i32
  }
}

module attributes {stable_mosaic.version = 11 : i64} {
  func.func @_sublayer_connection_kernel(%arg0: i32, %arg1: memref<8x32xf32, #tpu.memory_space<vmem>>, %arg2: memref<32x32xbf16, #tpu.memory_space<vmem>>, %arg3: memref<1x32xf32, #tpu.memory_space<vmem>>, %arg4: memref<8x32xf32, #tpu.memory_space<vmem>>) attributes {dimension_semantics = [#tpu.dimension_semantics<parallel>], iteration_bounds = array<i64: 2>, scalar_prefetch = 0 : i64, scratch_operands = 0 : i64, tpu.core_type = #tpu.core_type<tc>, window_params = [{transform_indices = @transform_0, window_bounds = array<i64: 8, 32>}, {pipeline_mode = #tpu.pipeline_mode<synchronous>, transform_indices = @transform_1, window_bounds = array<i64: 32, 32>}, {pipeline_mode = #tpu.pipeline_mode<synchronous>, transform_indices = @transform_2, window_bounds = array<i64: 1, 32>}, {transform_indices = @transform_3, window_bounds = array<i64: 8, 32>}]} {
    %c0 = arith.constant 0 : index
    %c0_0 = arith.constant 0 : index
    %0 = vector.load %arg1[%c0, %c0_0] : memref<8x32xf32, #tpu.memory_space<vmem>>, vector<8x32xf32>
    %cst = arith.constant dense<0.000000e+00> : vector<8xf32>
    %1 = vector.multi_reduction <add>, %0, %cst [1] : vector<8x32xf32> to vector<8xf32>
    %2 = vector.shape_cast %1 : vector<8xf32> to vector<8x1xf32>
    %cst_1 = arith.constant 3.125000e-02 : f32
    %3 = vector.broadcast %cst_1 : f32 to vector<8x1xf32>
    %4 = arith.mulf %2, %3 : vector<8x1xf32>
    %5 = vector.broadcast %4 : vector<8x1xf32> to vector<8x32xf32>
    %6 = arith.subf %0, %5 : vector<8x32xf32>
    %7 = arith.mulf %6, %6 : vector<8x32xf32>
    %cst_2 = arith.constant dense<0.000000e+00> : vector<8xf32>
    %8 = vector.multi_reduction <add>, %7, %cst_2 [1] : vector<8x32xf32> to vector<8xf32>
    %9 = vector.shape_cast %8 : vector<8xf32> to vector<8x1xf32>
    %cst_3 = arith.constant 0.0322580636 : f32
    %10 = vector.broadcast %cst_3 : f32 to vector<8x1xf32>
    %11 = arith.mulf %9, %10 : vector<8x1xf32>
    %12 = math.sqrt %11 : vector<8x1xf32>
    %cst_4 = arith.constant 9.99999997E-7 : f32
    %13 = vector.broadcast %cst_4 : f32 to vector<8x1xf32>
    %14 = arith.addf %12, %13 : vector<8x1xf32>
    %15 = tpu.reciprocal %14 {approx = true} : vector<8x1xf32> -> vector<8x1xf32>
    %16 = vector.broadcast %15 : vector<8x1xf32> to vector<8x32xf32>
    %17 = arith.mulf %6, %16 : vector<8x32xf32>
    %18 = arith.truncf %17 : vector<8x32xf32> to vector<8x32xbf16>
    %c0_5 = arith.constant 0 : index
    %c0_6 = arith.constant 0 : index
    %19 = vector.load %arg2[%c0_5, %c0_6] : memref<32x32xbf16, #tpu.memory_space<vmem>>, vector<32x32xbf16>
    %cst_7 = arith.constant dense<0.000000e+00> : vector<8x32xf32>
    %20 = tpu.matmul %18, %19, %cst_7 {dimension_numbers = #tpu.dot_dimension_numbers<[1], [0], [0], [1], [0, 0, 1, 1], [], []>} : vector<8x32xbf16>, vector<32x32xbf16>, vector<8x32xf32> -> vector<8x32xf32>
    %c0_8 = arith.constant 0 : index
    %c0_9 = arith.constant 0 : index
    %21 = vector.load %arg3[%c0_8, %c0_9] : memref<1x32xf32, #tpu.memory_space<vmem>>, vector<1x32xf32>
    %22 = vector.broadcast %21 : vector<1x32xf32> to vector<8x32xf32>
    %23 = arith.addf %20, %22 : vector<8x32xf32>
    %24 = arith.addf %0, %23 : vector<8x32xf32>
    %c0_10 = arith.constant 0 : index
    %c0_11 = arith.constant 0 : index
    %25 = vector.load %arg4[%c0_10, %c0_11] : memref<8x32xf32, #tpu.memory_space<vmem>>, vector<8x32xf32>
    tpu.vector_store %arg4[%c0_10, %c0_11], %24 {strides = array<i32>} : memref<8x32xf32, #tpu.memory_space<vmem>>, vector<8x32xf32>,
    return
  }
  func.func @transform_0(%arg0: i32) -> (i32, i32) {
    %c0_i32 = arith.constant 0 : i32
    %c0_i32_0 = arith.constant 0 : i32
    return %arg0, %c0_i32 : i32, i32
  }
  func.func @transform_1(%arg0: i32) -> (i32, i32) {
    %c0_i32 = arith.constant 0 : i32
    %c0_i32_0 = arith.constant 0 : i32
    %c0_i32_1 = arith.constant 0 : i32
    return %c0_i32, %c0_i32_0 : i32, i32
  }
  func.func @transform_2(%arg0: i32) -> (i32, i32) {
    %c0_i32 = arith.constant 0 : i32
    %c0_i32_0 = arith.constant 0 : i32
    %c0_i32_1 = arith.constant 0 : i32
    return %c0_i32, %c0_i32_0 : i32, i32
  }
  func.func @transform_3(%arg0: i32) -> (i32, i32) {
    %c0_i32 = arith.constant 0 : i32
    %c0_i32_0 = arith.constant 0 : i32
    return %arg0, %c0_i32 : i32, i32
  }
}

</mosaic_0001>

<bundles_post_ra>
// kernel: tpu_custom_call.1
= control target key start
LH: loop header
LB: loop body
LE: loop exit
PB: predicated region body
PF: predicated region fallthrough
CT: control target
= control target key end

     0   :  { %8 = vsyncpa [#allocation3], 0  ;;  %s847_s0 = inlined_call_operand.hbm [shape: f32[16,32], index: 0, kind: input, shape index: {}]   ;;  %s848_s1 = inlined_call_operand.hbm [shape: bf16[32,32], index: 1, kind: input, shape index: {}]   ;;  %s849_s2 = inlined_call_operand.vmem [shape: f32[1,32], index: 2, kind: input, shape index: {}]   ;;  %s850_s3 = inlined_call_operand.hbm [shape: f32[16,32], index: 3, kind: output, shape index: {}]  }
   0x1   :  { %10 = vsyncpa [#allocation3 + $0x1], 0 }
   0x2   :  { %11 = vsyncpa [#allocation6], 0 }
   0x3   :  { %12 = vsyncpa [#allocation4], 0 }
   0x4   :  { %14 = vsyncpa [#allocation4 + $0x1], 0  ;;  %s640_s12 = smov 0   ;;  %s642_s13 = smov 0  }
   0x5   :  { %s644_s14 = smov 0   ;;  %s646_s15 = smov 0  }
   0x6 LB: > { %s661_s16 = sadd.s32 4294967295, %s611_s15   ;;  %s387_s17 = sadd.s32 4294967294, %s611_s15   ;;  %s611_s15 = sphi %s646_s15, %s870_s15   ;;  %s607_s14 = sphi %s644_s14, %s869_s14   ;;  %s603_s13 = sphi %s642_s13, %s868_s13   ;;  %s599_s12 = sphi %s640_s12, %s867_s12  }
   0x7   : > { %p40_p0 = scmp.ne.s32.totalorder %s603_s13, %s599_s12  ;;  %p851_p1 = scmp.eq.s32.totalorder %s661_s16, 0 }
   0x8   : > { %p112_p3 = scmp.eq.s32.totalorder %s387_s17, 1  ;;  %p388_p5 = scmp.ge.s32.totalorder %s611_s15, 1 }
   0x9   : > { %p670_p4 = por %p851_p1, %p40_p0  ;;  %p119_p7 = scmp.lt.s32.totalorder %s611_s15, 3 }
   0xa   : > { %p675_p6 = por %p112_p3, %p40_p0  ;;  %s613_s21 = smov [#allocation5]  }
   0xb   : > { %s854_s18 = scalar_select %p670_p4, 1, 0 }
   0xc   : > { %s855_s19 = scalar_select %p675_p6, 1, 0 }
   0xd   : > { %p680_p8 = pnand %p388_p5, %p119_p7  ;;  %s131_s22 = sshll.u32 %s613_s21, 4  ;;  %s684_s22 = int_to_ptr.vmem [resolvable:$true] %s131_s22 }
   0xe   : > { %s696_s24 = sadd.s32 1, %s611_s15   ;;  %s27_s25 = sadd.s32 1, %s607_s14 }
   0xf   : > { %s856_s20 = scalar_select %p680_p8, 1, 0 }
  0x10   : > { %p424_p9 = pneg %p680_p8  ;;  %s24_s26 = ssub.s32 %s611_s15, %s696_s24 }
  0x11   : > { %s483_s29 = scalar_lea.hbm %s848_s1, 256 }
  0x12   : > { %p691_p11 = pnand %p424_p9, %p851_p1  ;;  %p484_p12 = scmp.ne.s32.totalorder %s848_s1, %s483_s29 }
  0x13   : > { %p490_p5 = scmp.lt.u32.totalorder %s483_s29, %s848_s1 }
  0x14   : > { %p485_p13 = pneg %p691_p11 }
  0x16   : > { %p486_p0 = pnand %p485_p13, %p484_p12 }
  0x18   : > { %p487_p3 = pneg %p486_p0 }
  0x1a   : > { %p492_p7 = pnand %p490_p5, %p487_p3 }
  0x1c   : > { %495 = shalt.err (!%p492_p7)
}
  0x1d   : > { %s496_s7 = scalar_lea.vmem %s684_s22, 256  ;;  %p504_p2 = scmp.lt.s32.totalorder %s684_s22, %s684_s22 }
  0x1e   : > { %p497_p9 = scmp.ne.s32.totalorder %s684_s22, %s496_s7  ;;  %p505_p6 = scmp.lt.s32.totalorder %s496_s7, %s496_s7 }
  0x20   : > { %p499_p10 = pnand %p497_p9, %p485_p13  ;;  %p506_p4 = por %p505_p6, %p504_p2 }
  0x22   : > { %p500_p1 = pneg %p499_p10 }
  0x24   : > { %p507_p8 = pnand %p506_p4, %p500_p1 }
  0x26   : > { %510 = shalt.err (!%p507_p8)
}
  0x27   : > { %s614_s8 = smov 64   ;;  %s615_s9 = smov 4  }
  0x28   : > { %427 = dma.hbm_to_vmem [thread:$0]  (!%p691_p11), %s848_s1, 256, %s684_s22, [#allocation6], %s614_s8, %s614_s8, %s615_s9  }
  0x29   : > { %p25_p2 = scmp.eq.s32.totalorder %s24_s26, 0  ;;  %p34_p1 = scmp.ne.s32.totalorder %s607_s14, %s603_s13 }
  0x2a   : > { %p35_p4 = scmp.eq.s32.totalorder %s611_s15, 0  ;;  %p437_p6 = scmp.lt.s32.totalorder %s611_s15, 2 }
  0x2b   : > { %s727_s17 = scalar_select %p25_p2, %s607_s14, %s27_s25  }
  0x2c   : > { %p36_p8 = por %p35_p4, %p34_p1  ;;  %p858_p10 = scmp.eq.s32.totalorder %s661_s16, 1 }
  0x2d   : > { %s148_s27 = sand.u32 1, %s607_s14   ;;  %s392_s28 = sshll.u32 %s611_s15, 7 }
  0x2e   : > { %p731_p12 = por %p858_p10, %p34_p1  ;;  %s391_s29 = sshll.u32 %s148_s27, 3 }
  0x2f   : > { %s740_s4 = scalar_lea.hbm %s847_s0, %s392_s28  ;;  %s152_s22 = scalar_lea.vmem [#allocation2], %s391_s29 }
  0x30   : > { %s159_s25 = sshll.u32 %s152_s22, 4  ;;  %p742_p11 = pnand %p437_p6, %p36_p8  ;;  %s746_s25 = int_to_ptr.vmem [resolvable:$true] %s159_s25 }
  0x31   : > { %s149_s5 = scalar_lea.sflag [#allocation3], %s148_s27  ;;  %s511_s6 = scalar_lea.hbm %s740_s4, 128 }
  0x32   : > { %p512_p13 = scmp.ne.s32.totalorder %s740_s4, %s511_s6  ;;  %p513_p0 = pneg %p742_p11 }
  0x33   : > { %s516_s9 = scalar_lea.hbm %s847_s0, 256  ;;  %p517_p7 = scmp.lt.u32.totalorder %s740_s4, %s847_s0 }
  0x34   : > { %p514_p3 = pnand %p513_p0, %p512_p13  ;;  %p518_p9 = scmp.lt.u32.totalorder %s516_s9, %s511_s6 }
  0x35   : > { %p520_p1 = scmp.lt.u32.totalorder %s511_s6, %s740_s4 }
  0x36   : > { %p515_p5 = pneg %p514_p3  ;;  %p519_p2 = por %p518_p9, %p517_p7 }
  0x38   : > { %p521_p4 = por %p520_p1, %p519_p2 }
  0x3a   : > { %p522_p6 = pnand %p521_p4, %p515_p5 }
  0x3c   : > { %525 = shalt.err (!%p522_p6)
}
  0x3d   : > { %s526_s27 = scalar_lea.vmem %s746_s25, 128  ;;  %s616_s28 = smov [#allocation2]  }
  0x3e   : > { %p527_p8 = scmp.ne.s32.totalorder %s746_s25, %s526_s27  ;;  %s531_s29 = sshll.u32 %s616_s28, 4  ;;  %s532_s29 = int_to_ptr.vmem [resolvable:$false] %s531_s29 }
  0x3f   : > { %s533_s23 = scalar_lea.vmem %s532_s29, 256  ;;  %p534_p3 = scmp.lt.s32.totalorder %s746_s25, %s532_s29 }
  0x40   : > { %p529_p10 = pnand %p527_p8, %p513_p0  ;;  %p535_p7 = scmp.lt.s32.totalorder %s533_s23, %s526_s27 }
  0x42   : > { %p530_p13 = pneg %p529_p10  ;;  %p536_p9 = por %p535_p7, %p534_p3 }
  0x44   : > { %p537_p2 = pnand %p536_p9, %p530_p13 }
  0x46   : > { %540 = shalt.err (!%p537_p2)
}
  0x47   : > { %431 = dma.hbm_to_vmem [thread:$0]  (!%p742_p11), %s740_s4, 128, %s746_s25, %s149_s5  }
  0x48   : > { %p861_p5 = scmp.ne.s32.totalorder %s856_s20, 0 }
  0x49   : > { %s776_s30 = sand.u32 (!%p861_p5), 1, %s603_s13   ;;  %p862_p0 = scmp.ne.s32.totalorder (!%p861_p5), %s854_s18, 0 }
  0x4a   : > { %168 = sbr.rel (%p861_p5) target bundleno = 642 (0x282), region = 32  ;;  %s394_s22 = sshll.u32 (!%p861_p5), %s776_s30, 3 }
  0x4b   : > { %s171_s6 = scalar_lea.sflag (!%p861_p5), [#allocation3], %s776_s30  ;;  %s174_s7 = scalar_lea.vmem (!%p861_p5), [#allocation2], %s394_s22 }
  0x51   : > { %586 = dma.done.wait (%p862_p0), %s171_s6, 128  }
  0x52   : > { %588 = vsyncadd (%p862_p0), %s171_s6, 4294967168  ;;  %p863_p11 = scmp.eq.s32.totalorder %s661_s16, 0 }
  0x54   : > { %590 = dma.done.wait (%p863_p11), [#allocation6], 256   ;;  %p864_p1 = pmov %p863_p11 }
  0x55   : > { %vm203_vm0 = vcmask 261120   ;;  %v202_v0 = vld [vmem:[%s174_s7] sm:$0xff]  ;;  %v477_v7 = vld [vmem:[#allocation5] sm:$0xff]   ;;  %v617_v8 = vmov 0.0   ;;  %vm618_vm1 = vmmov 0   ;;  %v478_v9 = vld [vmem:[#allocation5 + $0x8] sm:$0xff]  }
  0x56   : > { %592 = vsyncadd (%p864_p1), [#allocation6], 4294967040  ;;  %v204_v1 = vsel %vm203_vm0, %v202_v0, 0.0  ;;  %408 = vmatprep.subr.bf16.mxu0 %v617_v8  ;;  %412 = vmatprep.mubr.msk.bf16.mxu0 %vm618_vm1, %v617_v8  ;;  %v397_v21 = vld [vmem:[%s849_s2] ss:$0 sm:$0xff]  ;;  %s402_s4 = sshll.u32 %s661_s16, 7 }
  0x57   : > { %205 = vadd.xlane.f32.xlu0 %v204_v1  ;;  %409 = vmatpush3.bf16.msra.mxu0 %v477_v7  ;;  %s200_s25 = scalar_lea.vmem [#allocation7], %s394_s22  ;;  %s802_s9 = scalar_lea.hbm %s850_s3, %s402_s4 }
  0x58   : > { %410 = vmatprep.subr.bf16.mxu0 %v617_v8  ;;  %s307_s26 = sshll.u32 %s200_s25, 4  ;;  %s294_s16 = scalar_lea.sflag [#allocation4], %s776_s30  ;;  %s804_s26 = int_to_ptr.vmem [resolvable:$true] %s307_s26 }
  0x59   : > { %s541_s10 = scalar_lea.vmem %s804_s26, 128  ;;  %s619_s11 = smov [#allocation7]  }
  0x5a   : > { %p542_p4 = scmp.ne.s32.totalorder %s804_s26, %s541_s10  ;;  %s545_s27 = sshll.u32 %s619_s11, 4  ;;  %s546_s27 = int_to_ptr.vmem [resolvable:$false] %s545_s27 }
  0x5b   : > { %411 = vmatpush3.bf16.msra.mxu0 %v478_v9  ;;  %s547_s28 = scalar_lea.vmem %s546_s27, 256  ;;  %p548_p10 = scmp.lt.s32.totalorder %s804_s26, %s546_s27 }
  0x5c   : > { %p543_p6 = pnand %p542_p4, %p731_p12  ;;  %p549_p13 = scmp.lt.s32.totalorder %s547_s28, %s541_s10 }
  0x5e   : > { %p544_p8 = pneg %p543_p6  ;;  %p550_p3 = por %p549_p13, %p548_p10 }
  0x60   : > { %p551_p7 = pnand %p550_p3, %p544_p8 }
  0xe4   : > { %v206_v2 = vpop.xlane.xlu0 %205 }
  0xe5   : > { %v207_v3 = vmul.f32 0.03125, %v206_v2 }
  0xe7   : > { %v208_v4 = vsub.f32 %v202_v0, %v207_v3 }
  0xe9   : > { %v209_v5 = vmul.f32 %v208_v4, %v208_v4 }
  0xeb   : > { %v210_v6 = vsel %vm203_vm0, %v209_v5, 0.0 }
  0xec   : > { %211 = vadd.xlane.f32.xlu0 %v210_v6 }
 0x179   : > { %v212_v10 = vpop.xlane.xlu0 %211 }
 0x17a   : > { %v213_v11 = vmul.f32 0.032258064, %v212_v10 }
 0x17c   : > { %479 = vrsqrt.f32 %v213_v11  ;;  %vm216_vm2 = vcmp.eq.f32.partialorder %v213_v11, inf  ;;  %v219_v14 = vand.u32 2147483648, %v213_v11  ;;  %vm218_vm3 = vcmp.eq.f32.partialorder %v213_v11, 0.0 }
 0x186   : > { %v480_v12 = vpop.eup %479 }
 0x187   : > { %v215_v13 = vmul.f32 %v480_v12, %v213_v11 }
 0x189   : > { %v217_v15 = vsel %vm216_vm2, %v213_v11, %v215_v13 }
 0x18a   : > { %v220_v16 = vsel %vm218_vm3, %v219_v14, %v217_v15 }
 0x18b   : > { %v221_v17 = vadd.f32 1e-06, %v220_v16 }
 0x18d   : > { %481 = vrcp.f32 %v221_v17 }
 0x197   : > { %v482_v18 = vpop.eup %481 }
 0x198   : > { %v223_v19 = vmul.f32 %v482_v18, %v208_v4 }
 0x19a   : > { %v224_v20 = vpack.c.bf16 %v223_v19, %v223_v19 }
 0x19c   : > { %413 = vmatmul.mubr.msk.bf16.vlgmr.msra.gmra.mrb[0].mxu0 %vm203_vm0, %v224_v20 }
 0x26f   : > { %v285_v22 = vpop.f32.mrb[0].mxu0 }
 0x270   : > { %v286_v23 = vadd.f32 %v397_v21, %v285_v22  ;;  %v414_v24 = vpop.f32.mrb[1].mxu0 }
 0x271   : > { %v288_v25 = vpop.f32.mrb[2].mxu0 }
 0x272   : > { %v291_v26 = vadd.f32 %v286_v23, %v202_v0  ;;  %v415_v27 = vpop.f32.mrb[3].mxu0 }
 0x274   : > { %292 = vst.msk [vmem:[%s200_s25] sm:$0xff] %vm203_vm0, %v291_v26 }
 0x275   : > { %554 = shalt.err (!%p551_p7)
}
 0x276   : > { %s555_s29 = scalar_lea.hbm %s802_s9, 128  ;;  %s559_s22 = scalar_lea.hbm %s850_s3, 256 }
 0x277   : > { %p556_p9 = scmp.ne.s32.totalorder %s802_s9, %s555_s29  ;;  %p560_p0 = scmp.lt.u32.totalorder %s802_s9, %s850_s3 }
 0x278   : > { %p561_p11 = scmp.lt.u32.totalorder %s559_s22, %s555_s29  ;;  %p563_p4 = scmp.lt.u32.totalorder %s555_s29, %s802_s9 }
 0x279   : > { %p557_p2 = pnand %p556_p9, %p731_p12 }
 0x27a   : > { %p562_p1 = por %p561_p11, %p560_p0 }
 0x27b   : > { %p558_p5 = pneg %p557_p2 }
 0x27c   : > { %p564_p6 = por %p563_p4, %p562_p1 }
 0x27e   : > { %p565_p8 = pnand %p564_p6, %p558_p5 }
 0x280   : > { %568 = shalt.err (!%p565_p8)
}
 0x281   : > { %422 = dma.vmem_to_hbm [thread:$0]  (%p731_p12), %s804_s26, 128, %s802_s9, %s294_s16  }
 0x282 PF: > { %s319_s18 = sand.u32 1, %s599_s12   ;;  %p865_p10 = scmp.ne.s32.totalorder %s855_s19, 0 }
 0x283   : > { %p866_p13 = scmp.ge.s32.totalorder %s611_s15, 2  ;;  %s320_s20 = scalar_lea.sflag [#allocation4], %s319_s18 }
 0x285   : > { %p433_p3 = pnand %p866_p13, %p865_p10 }
 0x287   : > { %594 = dma.done.wait (!%p433_p3), %s320_s20, 128  }
 0x288   : > { %596 = vsyncadd (!%p433_p3), %s320_s20, 4294967168  ;;  %p17_p7 = scmp.ge.s32.totalorder %s696_s24, 4   ;;  %s867_s12 = smov %s603_s13 }
 0x289   : > { %s868_s13 = smov %s607_s14  ;;  %s869_s14 = smov %s727_s17 }
 0x28a   : > { %s870_s15 = smov %s696_s24  ;;  %19 = sbr.rel (!%p17_p7) target bundleno = 6 (0x6), region = 81 }
 0x291   :  { %325 = vsyncpa [#allocation3], 1 }
 0x292   :  { %327 = vsyncpa [#allocation3 + $0x1], 1 }
 0x293   :  { %328 = vsyncpa [#allocation6], 1 }
 0x294   :  { %329 = vsyncpa [#allocation4], 1 }
 0x295   :  { %331 = vsyncpa [#allocation4 + $0x1], 1 }

// kernel: tpu_custom_call.1
= control target key start
LH: loop header
LB: loop body
LE: loop exit
PB: predicated region body
PF: predicated region fallthrough
CT: control target
= control target key end

     0   :  { %8 = vsyncpa [#allocation3], 0  ;;  %s847_s0 = inlined_call_operand.hbm [shape: f32[16,32], index: 0, kind: input, shape index: {}]   ;;  %s848_s1 = inlined_call_operand.hbm [shape: bf16[32,32], index: 1, kind: input, shape index: {}]   ;;  %s849_s2 = inlined_call_operand.vmem [shape: f32[1,32], index: 2, kind: input, shape index: {}]   ;;  %s850_s3 = inlined_call_operand.hbm [shape: f32[16,32], index: 3, kind: output, shape index: {}]  }
   0x1   :  { %10 = vsyncpa [#allocation3 + $0x1], 0 }
   0x2   :  { %11 = vsyncpa [#allocation6], 0 }
   0x3   :  { %12 = vsyncpa [#allocation4], 0 }
   0x4   :  { %14 = vsyncpa [#allocation4 + $0x1], 0  ;;  %s640_s12 = smov 0   ;;  %s642_s13 = smov 0  }
   0x5   :  { %s644_s14 = smov 0   ;;  %s646_s15 = smov 0  }
   0x6 LB: > { %s661_s16 = sadd.s32 4294967295, %s611_s15   ;;  %s387_s17 = sadd.s32 4294967294, %s611_s15   ;;  %s611_s15 = sphi %s646_s15, %s870_s15   ;;  %s607_s14 = sphi %s644_s14, %s869_s14   ;;  %s603_s13 = sphi %s642_s13, %s868_s13   ;;  %s599_s12 = sphi %s640_s12, %s867_s12  }
   0x7   : > { %p40_p0 = scmp.ne.s32.totalorder %s603_s13, %s599_s12  ;;  %p851_p1 = scmp.eq.s32.totalorder %s661_s16, 0 }
   0x8   : > { %p112_p3 = scmp.eq.s32.totalorder %s387_s17, 1  ;;  %p388_p5 = scmp.ge.s32.totalorder %s611_s15, 1 }
   0x9   : > { %p670_p4 = por %p851_p1, %p40_p0  ;;  %p119_p7 = scmp.lt.s32.totalorder %s611_s15, 3 }
   0xa   : > { %p675_p6 = por %p112_p3, %p40_p0  ;;  %s613_s21 = smov [#allocation5]  }
   0xb   : > { %s854_s18 = scalar_select %p670_p4, 1, 0 }
   0xc   : > { %s855_s19 = scalar_select %p675_p6, 1, 0 }
   0xd   : > { %p680_p8 = pnand %p388_p5, %p119_p7  ;;  %s131_s22 = sshll.u32 %s613_s21, 4  ;;  %s684_s22 = int_to_ptr.vmem [resolvable:$true] %s131_s22 }
   0xe   : > { %s696_s24 = sadd.s32 1, %s611_s15   ;;  %s27_s25 = sadd.s32 1, %s607_s14 }
   0xf   : > { %s856_s20 = scalar_select %p680_p8, 1, 0 }
  0x10   : > { %p424_p9 = pneg %p680_p8  ;;  %s24_s26 = ssub.s32 %s611_s15, %s696_s24 }
  0x11   : > { %s483_s29 = scalar_lea.hbm %s848_s1, 256 }
  0x12   : > { %p691_p11 = pnand %p424_p9, %p851_p1  ;;  %p484_p12 = scmp.ne.s32.totalorder %s848_s1, %s483_s29 }
  0x13   : > { %p490_p5 = scmp.lt.u32.totalorder %s483_s29, %s848_s1 }
  0x14   : > { %p485_p13 = pneg %p691_p11 }
  0x16   : > { %p486_p0 = pnand %p485_p13, %p484_p12 }
  0x18   : > { %p487_p3 = pneg %p486_p0 }
  0x1a   : > { %p492_p7 = pnand %p490_p5, %p487_p3 }
  0x1c   : > { %495 = shalt.err (!%p492_p7)
}
  0x1d   : > { %s496_s7 = scalar_lea.vmem %s684_s22, 256  ;;  %p504_p2 = scmp.lt.s32.totalorder %s684_s22, %s684_s22 }
  0x1e   : > { %p497_p9 = scmp.ne.s32.totalorder %s684_s22, %s496_s7  ;;  %p505_p6 = scmp.lt.s32.totalorder %s496_s7, %s496_s7 }
  0x20   : > { %p499_p10 = pnand %p497_p9, %p485_p13  ;;  %p506_p4 = por %p505_p6, %p504_p2 }
  0x22   : > { %p500_p1 = pneg %p499_p10 }
  0x24   : > { %p507_p8 = pnand %p506_p4, %p500_p1 }
  0x26   : > { %510 = shalt.err (!%p507_p8)
}
  0x27   : > { %s614_s8 = smov 64   ;;  %s615_s9 = smov 4  }
  0x28   : > { %427 = dma.hbm_to_vmem [thread:$0]  (!%p691_p11), %s848_s1, 256, %s684_s22, [#allocation6], %s614_s8, %s614_s8, %s615_s9  }
  0x29   : > { %p25_p2 = scmp.eq.s32.totalorder %s24_s26, 0  ;;  %p34_p1 = scmp.ne.s32.totalorder %s607_s14, %s603_s13 }
  0x2a   : > { %p35_p4 = scmp.eq.s32.totalorder %s611_s15, 0  ;;  %p437_p6 = scmp.lt.s32.totalorder %s611_s15, 2 }
  0x2b   : > { %s727_s17 = scalar_select %p25_p2, %s607_s14, %s27_s25  }
  0x2c   : > { %p36_p8 = por %p35_p4, %p34_p1  ;;  %p858_p10 = scmp.eq.s32.totalorder %s661_s16, 1 }
  0x2d   : > { %s148_s27 = sand.u32 1, %s607_s14   ;;  %s392_s28 = sshll.u32 %s611_s15, 7 }
  0x2e   : > { %p731_p12 = por %p858_p10, %p34_p1  ;;  %s391_s29 = sshll.u32 %s148_s27, 3 }
  0x2f   : > { %s740_s4 = scalar_lea.hbm %s847_s0, %s392_s28  ;;  %s152_s22 = scalar_lea.vmem [#allocation2], %s391_s29 }
  0x30   : > { %s159_s25 = sshll.u32 %s152_s22, 4  ;;  %p742_p11 = pnand %p437_p6, %p36_p8  ;;  %s746_s25 = int_to_ptr.vmem [resolvable:$true] %s159_s25 }
  0x31   : > { %s149_s5 = scalar_lea.sflag [#allocation3], %s148_s27  ;;  %s511_s6 = scalar_lea.hbm %s740_s4, 128 }
  0x32   : > { %p512_p13 = scmp.ne.s32.totalorder %s740_s4, %s511_s6  ;;  %p513_p0 = pneg %p742_p11 }
  0x33   : > { %s516_s9 = scalar_lea.hbm %s847_s0, 256  ;;  %p517_p7 = scmp.lt.u32.totalorder %s740_s4, %s847_s0 }
  0x34   : > { %p514_p3 = pnand %p513_p0, %p512_p13  ;;  %p518_p9 = scmp.lt.u32.totalorder %s516_s9, %s511_s6 }
  0x35   : > { %p520_p1 = scmp.lt.u32.totalorder %s511_s6, %s740_s4 }
  0x36   : > { %p515_p5 = pneg %p514_p3  ;;  %p519_p2 = por %p518_p9, %p517_p7 }
  0x38   : > { %p521_p4 = por %p520_p1, %p519_p2 }
  0x3a   : > { %p522_p6 = pnand %p521_p4, %p515_p5 }
  0x3c   : > { %525 = shalt.err (!%p522_p6)
}
  0x3d   : > { %s526_s27 = scalar_lea.vmem %s746_s25, 128  ;;  %s616_s28 = smov [#allocation2]  }
  0x3e   : > { %p527_p8 = scmp.ne.s32.totalorder %s746_s25, %s526_s27  ;;  %s531_s29 = sshll.u32 %s616_s28, 4  ;;  %s532_s29 = int_to_ptr.vmem [resolvable:$false] %s531_s29 }
  0x3f   : > { %s533_s23 = scalar_lea.vmem %s532_s29, 256  ;;  %p534_p3 = scmp.lt.s32.totalorder %s746_s25, %s532_s29 }
  0x40   : > { %p529_p10 = pnand %p527_p8, %p513_p0  ;;  %p535_p7 = scmp.lt.s32.totalorder %s533_s23, %s526_s27 }
  0x42   : > { %p530_p13 = pneg %p529_p10  ;;  %p536_p9 = por %p535_p7, %p534_p3 }
  0x44   : > { %p537_p2 = pnand %p536_p9, %p530_p13 }
  0x46   : > { %540 = shalt.err (!%p537_p2)
}
  0x47   : > { %431 = dma.hbm_to_vmem [thread:$0]  (!%p742_p11), %s740_s4, 128, %s746_s25, %s149_s5  }
  0x48   : > { %p861_p5 = scmp.ne.s32.totalorder %s856_s20, 0 }
  0x49   : > { %s776_s30 = sand.u32 (!%p861_p5), 1, %s603_s13   ;;  %p862_p0 = scmp.ne.s32.totalorder (!%p861_p5), %s854_s18, 0 }
  0x4a   : > { %168 = sbr.rel (%p861_p5) target bundleno = 642 (0x282), region = 32  ;;  %s394_s22 = sshll.u32 (!%p861_p5), %s776_s30, 3 }
  0x4b   : > { %s171_s6 = scalar_lea.sflag (!%p861_p5), [#allocation3], %s776_s30  ;;  %s174_s7 = scalar_lea.vmem (!%p861_p5), [#allocation2], %s394_s22 }
  0x51   : > { %586 = dma.done.wait (%p862_p0), %s171_s6, 128  }
  0x52   : > { %588 = vsyncadd (%p862_p0), %s171_s6, 4294967168  ;;  %p863_p11 = scmp.eq.s32.totalorder %s661_s16, 0 }
  0x54   : > { %590 = dma.done.wait (%p863_p11), [#allocation6], 256   ;;  %p864_p1 = pmov %p863_p11 }
  0x55   : > { %vm203_vm0 = vcmask 261120   ;;  %v202_v0 = vld [vmem:[%s174_s7] sm:$0xff]  ;;  %v477_v7 = vld [vmem:[#allocation5] sm:$0xff]   ;;  %v617_v8 = vmov 0.0   ;;  %vm618_vm1 = vmmov 0   ;;  %v478_v9 = vld [vmem:[#allocation5 + $0x8] sm:$0xff]  }
  0x56   : > { %592 = vsyncadd (%p864_p1), [#allocation6], 4294967040  ;;  %v204_v1 = vsel %vm203_vm0, %v202_v0, 0.0  ;;  %408 = vmatprep.subr.bf16.mxu0 %v617_v8  ;;  %412 = vmatprep.mubr.msk.bf16.mxu0 %vm618_vm1, %v617_v8  ;;  %v397_v21 = vld [vmem:[%s849_s2] ss:$0 sm:$0xff]  ;;  %s402_s4 = sshll.u32 %s661_s16, 7 }
  0x57   : > { %205 = vadd.xlane.f32.xlu0 %v204_v1  ;;  %409 = vmatpush3.bf16.msra.mxu0 %v477_v7  ;;  %s200_s25 = scalar_lea.vmem [#allocation7], %s394_s22  ;;  %s802_s9 = scalar_lea.hbm %s850_s3, %s402_s4 }
  0x58   : > { %410 = vmatprep.subr.bf16.mxu0 %v617_v8  ;;  %s307_s26 = sshll.u32 %s200_s25, 4  ;;  %s294_s16 = scalar_lea.sflag [#allocation4], %s776_s30  ;;  %s804_s26 = int_to_ptr.vmem [resolvable:$true] %s307_s26 }
  0x59   : > { %s541_s10 = scalar_lea.vmem %s804_s26, 128  ;;  %s619_s11 = smov [#allocation7]  }
  0x5a   : > { %p542_p4 = scmp.ne.s32.totalorder %s804_s26, %s541_s10  ;;  %s545_s27 = sshll.u32 %s619_s11, 4  ;;  %s546_s27 = int_to_ptr.vmem [resolvable:$false] %s545_s27 }
  0x5b   : > { %411 = vmatpush3.bf16.msra.mxu0 %v478_v9  ;;  %s547_s28 = scalar_lea.vmem %s546_s27, 256  ;;  %p548_p10 = scmp.lt.s32.totalorder %s804_s26, %s546_s27 }
  0x5c   : > { %p543_p6 = pnand %p542_p4, %p731_p12  ;;  %p549_p13 = scmp.lt.s32.totalorder %s547_s28, %s541_s10 }
  0x5e   : > { %p544_p8 = pneg %p543_p6  ;;  %p550_p3 = por %p549_p13, %p548_p10 }
  0x60   : > { %p551_p7 = pnand %p550_p3, %p544_p8 }
  0xe4   : > { %v206_v2 = vpop.xlane.xlu0 %205 }
  0xe5   : > { %v207_v3 = vmul.f32 0.03125, %v206_v2 }
  0xe7   : > { %v208_v4 = vsub.f32 %v202_v0, %v207_v3 }
  0xe9   : > { %v209_v5 = vmul.f32 %v208_v4, %v208_v4 }
  0xeb   : > { %v210_v6 = vsel %vm203_vm0, %v209_v5, 0.0 }
  0xec   : > { %211 = vadd.xlane.f32.xlu0 %v210_v6 }
 0x179   : > { %v212_v10 = vpop.xlane.xlu0 %211 }
 0x17a   : > { %v213_v11 = vmul.f32 0.032258064, %v212_v10 }
 0x17c   : > { %479 = vrsqrt.f32 %v213_v11  ;;  %vm216_vm2 = vcmp.eq.f32.partialorder %v213_v11, inf  ;;  %v219_v14 = vand.u32 2147483648, %v213_v11  ;;  %vm218_vm3 = vcmp.eq.f32.partialorder %v213_v11, 0.0 }
 0x186   : > { %v480_v12 = vpop.eup %479 }
 0x187   : > { %v215_v13 = vmul.f32 %v480_v12, %v213_v11 }
 0x189   : > { %v217_v15 = vsel %vm216_vm2, %v213_v11, %v215_v13 }
 0x18a   : > { %v220_v16 = vsel %vm218_vm3, %v219_v14, %v217_v15 }
 0x18b   : > { %v221_v17 = vadd.f32 1e-06, %v220_v16 }
 0x18d   : > { %481 = vrcp.f32 %v221_v17 }
 0x197   : > { %v482_v18 = vpop.eup %481 }
 0x198   : > { %v223_v19 = vmul.f32 %v482_v18, %v208_v4 }
 0x19a   : > { %v224_v20 = vpack.c.bf16 %v223_v19, %v223_v19 }
 0x19c   : > { %413 = vmatmul.mubr.msk.bf16.vlgmr.msra.gmra.mrb[0].mxu0 %vm203_vm0, %v224_v20 }
 0x26f   : > { %v285_v22 = vpop.f32.mrb[0].mxu0 }
 0x270   : > { %v286_v23 = vadd.f32 %v397_v21, %v285_v22  ;;  %v414_v24 = vpop.f32.mrb[1].mxu0 }
 0x271   : > { %v288_v25 = vpop.f32.mrb[2].mxu0 }
 0x272   : > { %v291_v26 = vadd.f32 %v286_v23, %v202_v0  ;;  %v415_v27 = vpop.f32.mrb[3].mxu0 }
 0x274   : > { %292 = vst.msk [vmem:[%s200_s25] sm:$0xff] %vm203_vm0, %v291_v26 }
 0x275   : > { %554 = shalt.err (!%p551_p7)
}
 0x276   : > { %s555_s29 = scalar_lea.hbm %s802_s9, 128  ;;  %s559_s22 = scalar_lea.hbm %s850_s3, 256 }
 0x277   : > { %p556_p9 = scmp.ne.s32.totalorder %s802_s9, %s555_s29  ;;  %p560_p0 = scmp.lt.u32.totalorder %s802_s9, %s850_s3 }
 0x278   : > { %p561_p11 = scmp.lt.u32.totalorder %s559_s22, %s555_s29  ;;  %p563_p4 = scmp.lt.u32.totalorder %s555_s29, %s802_s9 }
 0x279   : > { %p557_p2 = pnand %p556_p9, %p731_p12 }
 0x27a   : > { %p562_p1 = por %p561_p11, %p560_p0 }
 0x27b   : > { %p558_p5 = pneg %p557_p2 }
 0x27c   : > { %p564_p6 = por %p563_p4, %p562_p1 }
 0x27e   : > { %p565_p8 = pnand %p564_p6, %p558_p5 }
 0x280   : > { %568 = shalt.err (!%p565_p8)
}
 0x281   : > { %422 = dma.vmem_to_hbm [thread:$0]  (%p731_p12), %s804_s26, 128, %s802_s9, %s294_s16  }
 0x282 PF: > { %s319_s18 = sand.u32 1, %s599_s12   ;;  %p865_p10 = scmp.ne.s32.totalorder %s855_s19, 0 }
 0x283   : > { %p866_p13 = scmp.ge.s32.totalorder %s611_s15, 2  ;;  %s320_s20 = scalar_lea.sflag [#allocation4], %s319_s18 }
 0x285   : > { %p433_p3 = pnand %p866_p13, %p865_p10 }
 0x287   : > { %594 = dma.done.wait (!%p433_p3), %s320_s20, 128  }
 0x288   : > { %596 = vsyncadd (!%p433_p3), %s320_s20, 4294967168  ;;  %p17_p7 = scmp.ge.s32.totalorder %s696_s24, 4   ;;  %s867_s12 = smov %s603_s13 }
 0x289   : > { %s868_s13 = smov %s607_s14  ;;  %s869_s14 = smov %s727_s17 }
 0x28a   : > { %s870_s15 = smov %s696_s24  ;;  %19 = sbr.rel (!%p17_p7) target bundleno = 6 (0x6), region = 81 }
 0x291   :  { %325 = vsyncpa [#allocation3], 1 }
 0x292   :  { %327 = vsyncpa [#allocation3 + $0x1], 1 }
 0x293   :  { %328 = vsyncpa [#allocation6], 1 }
 0x294   :  { %329 = vsyncpa [#allocation4], 1 }
 0x295   :  { %331 = vsyncpa [#allocation4 + $0x1], 1 }

</bundles_post_ra>
